<compile_context>
chip_gen: v6e
topology: v6e:2x2x1
jax: 0.10.0
libtpu: 0.0.40
codegen_flags: <defaults>
</compile_context>

<pallas_src>
import functools

import jax
import jax.numpy as jnp
from jax.experimental import pallas as pl
from jax.experimental.pallas import tpu as pltpu


def _round_up(n, m):
    return ((n + m - 1) // m) * m


def _vmem_capacity_bytes():
    """Physical per-core VMEM; conservative (v7x-sized) fallback if query fails."""
    try:
        info = pltpu.get_tpu_info()
        cap = getattr(info, "vmem_capacity_bytes", None)
        if cap:
            return int(cap)
    except Exception:
        pass
    return 64 * 1024 * 1024


def _row_plan(M, target):
    """Pick (row_tile, padded_rows).

    Prefers zero wasted rows by using a multiple-of-8 divisor of the
    sublane-padded row count; falls back to padding rows up to the target tile
    only when no MXU-friendly divisor exists.
    """
    M8 = _round_up(M, 8)
    if M8 <= target:
        return M8, M8
    best = 8
    for cand in range(8, target + 1, 8):
        if M8 % cand == 0:
            best = cand
    if best >= 128:                          # MXU-friendly, no padded rows
        return best, M8
    return target, _round_up(M, target)      # ragged: pad to the target tile


def _ffn_kernel_acc(x_ref, w1_ref, b1_ref, w2_ref, b2_ref, o_ref, acc_ref):
    """Variant with an f32 scratch accumulator (used for non-f32 outputs)."""
    j = pl.program_id(1)

    @pl.when(j == 0)
    def _init():
        acc_ref[...] = jnp.broadcast_to(
            b2_ref[...].astype(jnp.float32), acc_ref.shape)

    # First projection: native-dtype operands on the MXU, f32 accumulation.
    h = jnp.dot(x_ref[...], w1_ref[...], preferred_element_type=jnp.float32)
    h = jnp.maximum(h + b1_ref[...].astype(jnp.float32), 0.0)
    # TODO(synk): training-mode dropout (scaled Bernoulli mask) is omitted;
    # this forward matches PyTorch eval() semantics (dropout == identity).

    acc_ref[...] += jnp.dot(h.astype(w2_ref.dtype), w2_ref[...],
                            preferred_element_type=jnp.float32)

    @pl.when(j == pl.num_programs(1) - 1)
    def _finish():
        o_ref[...] = acc_ref[...].astype(o_ref.dtype)


def _ffn_kernel_f32out(x_ref, w1_ref, b1_ref, w2_ref, b2_ref, o_ref):
    """f32 output: accumulate directly into the resident output block
    (its block index is constant across the d_ff grid axis)."""
    j = pl.program_id(1)

    @pl.when(j == 0)
    def _init():
        o_ref[...] = jnp.broadcast_to(
            b2_ref[...].astype(jnp.float32), o_ref.shape)

    h = jnp.dot(x_ref[...], w1_ref[...], preferred_element_type=jnp.float32)
    h = jnp.maximum(h + b1_ref[...].astype(jnp.float32), 0.0)
    o_ref[...] += jnp.dot(h.astype(w2_ref.dtype), w2_ref[...],
                          preferred_element_type=jnp.float32)


@functools.partial(jax.jit, static_argnames=("tm", "tf", "compute_dtype"))
def positionwise_ffn_forward(x, w1_t, b1, w2_t, b2, *, tm=512, tf=512,
                             compute_dtype=None):
    """y = w2(relu(w1(x) + b1)) + b2   (PyTorch eval(): dropout == identity).

    x: (batch, seq, d_model); w1_t: (d_model, d_ff); b1: (d_ff,);
    w2_t: (d_ff, d_model); b2: (d_model,).  Output dtype == x.dtype.
    compute_dtype (e.g. jnp.bfloat16) optionally casts x / weights for the MXU
    (accumulation stays f32) -- halves HBM traffic, slightly looser numerics.
    """
    batch, seq, d_model = x.shape
    d_ff = w1_t.shape[1]
    M = batch * seq
    out_dtype = x.dtype

    x2d = x.reshape(M, d_model)
    if compute_dtype is not None:
        x2d = x2d.astype(compute_dtype)
        w1_t = w1_t.astype(compute_dtype)
        w2_t = w2_t.astype(compute_dtype)
    b1 = b1.astype(jnp.float32)
    b2 = b2.astype(jnp.float32)

    bx = x2d.dtype.itemsize
    bw = w1_t.dtype.itemsize
    bo = out_dtype.itemsize
    use_scratch = (out_dtype != jnp.float32)

    # ---- Generation-aware VMEM budget ------------------------------------
    vmem_cap = _vmem_capacity_bytes()          # 128 MiB v5e/v6e, 64 MiB v7x
    vmem_limit = int(vmem_cap * 0.85)          # headroom for Mosaic scratch/DMA
    tile_budget = int(vmem_cap * 0.70)         # budget used for tile sizing

    def _fits(tm_e, tf_e):
        vmem = (2 * tm_e * d_model * bx            # x tile (double-buffered)
                + 4 * d_model * tf_e * bw          # w1 + w2 tiles (double-buffered)
                + 2 * tf_e * 4 + 2 * d_model * 4   # biases
                + 2 * tm_e * d_model * bo          # output tile
                + tm_e * tf_e * 4)                 # f32 intermediate h
        if use_scratch:
            vmem += tm_e * d_model * 4             # f32 accumulator scratch
        return vmem <= tile_budget

    # ---- d_ff tile candidates: full residency first, then 128-multiples ---
    if d_ff < 128:
        tf_cands = [d_ff]
    else:
        dff128 = _round_up(d_ff, 128)
        tf_cands = [dff128]                        # weights fully VMEM-resident
        t = max(128, (min(tf, dff128) // 128) * 128)
        while t >= 128:
            if t < dff128:
                tf_cands.append(t)
            t //= 2

    # ---- Row tile candidates: large first (amortizes weight streaming) ----
    tm_targets = []
    t = max(tm, 128)
    while t >= 128:
        tm_targets.append(t)
        t //= 2

    tm_eff = M_pad = tf_eff = None
    for tmt in tm_targets:
        tm_c, M_pad_c = _row_plan(M, tmt)
        for tf_c in tf_cands:
            if _fits(tm_c, tf_c):
                tm_eff, M_pad, tf_eff = tm_c, M_pad_c, tf_c
                break
        if tm_eff is not None:
            break
    if tm_eff is None:                             # pathological shapes: smallest tiles
        tm_eff, M_pad = _row_plan(M, 128)
        tf_eff = tf_cands[-1]

    # ---- Pad arrays to the chosen tiles -----------------------------------
    if M_pad != M:
        x2d = jnp.pad(x2d, ((0, M_pad - M), (0, 0)))
    dff_pad = _round_up(d_ff, tf_eff)
    if dff_pad != d_ff:
        pad = dff_pad - d_ff
        w1_t = jnp.pad(w1_t, ((0, 0), (0, pad)))
        b1 = jnp.pad(b1, ((0, pad),))
        w2_t = jnp.pad(w2_t, ((0, pad), (0, 0)))

    b1_2d = b1.reshape(1, dff_pad)
    b2_2d = b2.reshape(1, d_model)

    n_row_tiles = M_pad // tm_eff
    n_j = dff_pad // tf_eff
    grid = (n_row_tiles, n_j)

    # Weights are re-streamed once per row tile unless fully resident
    # (n_j == 1 -> constant block index -> fetched exactly once).
    weight_passes = 1 if n_j == 1 else n_row_tiles
    bytes_accessed = (
        x2d.size * bx
        + weight_passes * (w1_t.size * bw + w2_t.size * bw + b1_2d.size * 4)
        + b2_2d.size * 4
        + M_pad * d_model * bo)
    cost = pl.CostEstimate(
        flops=4 * M_pad * d_model * dff_pad,       # two matmuls
        transcendentals=0,
        bytes_accessed=int(bytes_accessed))

    kernel = _ffn_kernel_acc if use_scratch else _ffn_kernel_f32out
    scratch_shapes = ([pltpu.VMEM((tm_eff, d_model), jnp.float32)]
                      if use_scratch else [])

    out2d = pl.pallas_call(
        kernel,
        out_shape=jax.ShapeDtypeStruct((M_pad, d_model), out_dtype),
        grid_spec=pltpu.PrefetchScalarGridSpec(
            num_scalar_prefetch=0,
            grid=grid,
            in_specs=[
                pl.BlockSpec((tm_eff, d_model), lambda i, j: (i, 0)),   # x rows (resident over j)
                pl.BlockSpec((d_model, tf_eff), lambda i, j: (0, j)),   # w1 (d_ff tiled)
                pl.BlockSpec((1, tf_eff), lambda i, j: (0, j)),         # b1 tile
                pl.BlockSpec((tf_eff, d_model), lambda i, j: (j, 0)),   # w2 (d_ff tiled)
                pl.BlockSpec((1, d_model), lambda i, j: (0, 0)),        # b2 (resident)
            ],
            out_specs=pl.BlockSpec((tm_eff, d_model), lambda i, j: (i, 0)),
            scratch_shapes=scratch_shapes,
        ),
        compiler_params=pltpu.CompilerParams(
            dimension_semantics=("parallel", "arbitrary"),
            vmem_limit_bytes=vmem_limit,
        ),
        cost_estimate=cost,
    )(x2d, w1_t, b1_2d, w2_t, b2_2d)

    return out2d[:M].reshape(batch, seq, d_model)


if __name__ == "__main__":
    # Small, TPU-friendly shapes consistent with the module's forward.
    batch, seq, d_model, d_ff = 2, 8, 32, 64

    key = jax.random.PRNGKey(0)
    kx, kw1, kb1, kw2, kb2 = jax.random.split(key, 5)

    x = jax.random.normal(kx, (batch, seq, d_model), dtype=jnp.float32)

    # Deterministic nn.Linear-style parameters (PyTorch layout: (out, in)).
    bound1 = 1.0 / (d_model ** 0.5)
    w1 = jax.random.uniform(kw1, (d_ff, d_model), minval=-bound1, maxval=bound1,
                            dtype=jnp.float32)
    b1 = jax.random.uniform(kb1, (d_ff,), minval=-bound1, maxval=bound1,
                            dtype=jnp.float32)
    bound2 = 1.0 / (d_ff ** 0.5)
    w2 = jax.random.uniform(kw2, (d_model, d_ff), minval=-bound2, maxval=bound2,
                            dtype=jnp.float32)
    b2 = jax.random.uniform(kb2, (d_model,), minval=-bound2, maxval=bound2,
                            dtype=jnp.float32)

    # Pure-JAX reference (PyTorch eval() forward: dropout == identity).
    h_ref = jnp.maximum(jnp.einsum("bsd,fd->bsf", x, w1) + b1, 0.0)
    ref = jnp.einsum("bsf,df->bsd", h_ref, w2) + b2

    # 1) f32 path (accumulates directly into the resident output block).
    out = positionwise_ffn_forward(x, w1.T, b1, w2.T, b2)
    jax.block_until_ready(out)
    assert out.shape == (batch, seq, d_model)
    assert out.dtype == jnp.float32
    assert jnp.allclose(out, ref, atol=1e-5, rtol=1e-5)

    # 2) Mixed precision: f32 in/out, bf16 operands on the MXU.
    out_mixed = positionwise_ffn_forward(x, w1.T, b1, w2.T, b2,
                                         compute_dtype=jnp.bfloat16)
    jax.block_until_ready(out_mixed)
    assert out_mixed.dtype == jnp.float32
    assert jnp.allclose(out_mixed, ref, atol=3e-2, rtol=3e-2)

    # 3) bf16 inputs/outputs (exercises the f32 scratch-accumulator kernel).
    out_bf16 = positionwise_ffn_forward(
        x.astype(jnp.bfloat16), w1.astype(jnp.bfloat16).T, b1,
        w2.astype(jnp.bfloat16).T, b2)
    jax.block_until_ready(out_bf16)
    assert out_bf16.dtype == jnp.bfloat16
    assert jnp.allclose(out_bf16.astype(jnp.float32), ref, atol=3e-2, rtol=3e-2)

    print("KERNEL_OK")
</pallas_src>

<mosaic_0001>
module attributes {stable_mosaic.version = 11 : i64} {
  func.func @_ffn_kernel_f32out(%arg0: i32, %arg1: i32, %arg2: memref<16x32xf32, #tpu.memory_space<vmem>>, %arg3: memref<32x64xf32, #tpu.memory_space<vmem>>, %arg4: memref<1x64xf32, #tpu.memory_space<vmem>>, %arg5: memref<64x32xf32, #tpu.memory_space<vmem>>, %arg6: memref<1x32xf32, #tpu.memory_space<vmem>>, %arg7: memref<16x32xf32, #tpu.memory_space<vmem>>) attributes {dimension_semantics = [#tpu.dimension_semantics<parallel>, #tpu.dimension_semantics<arbitrary>], iteration_bounds = array<i64: 1, 1>, scalar_prefetch = 0 : i64, scratch_operands = 0 : i64, tpu.core_type = #tpu.core_type<tc>, window_params = [{transform_indices = @transform_0, window_bounds = array<i64: 16, 32>}, {transform_indices = @transform_1, window_bounds = array<i64: 32, 64>}, {transform_indices = @transform_2, window_bounds = array<i64: 1, 64>}, {transform_indices = @transform_3, window_bounds = array<i64: 64, 32>}, {pipeline_mode = #tpu.pipeline_mode<synchronous>, transform_indices = @transform_4, window_bounds = array<i64: 1, 32>}, {transform_indices = @transform_5, window_bounds = array<i64: 16, 32>}]} {
    %c0_i32 = arith.constant 0 : i32
    %0 = arith.cmpi eq, %arg1, %c0_i32 : i32
    %1 = arith.extui %0 : i1 to i32
    %c0_i32_0 = arith.constant 0 : i32
    %2 = arith.cmpi ne, %1, %c0_i32_0 : i32
    scf.if %2 {
      %c0_14 = arith.constant 0 : index
      %c0_15 = arith.constant 0 : index
      %16 = vector.load %arg6[%c0_14, %c0_15] : memref<1x32xf32, #tpu.memory_space<vmem>>, vector<1x32xf32>
      %17 = vector.shape_cast %16 : vector<1x32xf32> to vector<1x32xf32>
      %18 = vector.broadcast %17 : vector<1x32xf32> to vector<16x32xf32>
      %c0_16 = arith.constant 0 : index
      %c0_17 = arith.constant 0 : index
      %19 = vector.load %arg7[%c0_16, %c0_17] : memref<16x32xf32, #tpu.memory_space<vmem>>, vector<16x32xf32>
      tpu.vector_store %arg7[%c0_16, %c0_17], %18 {strides = array<i32>} : memref<16x32xf32, #tpu.memory_space<vmem>>, vector<16x32xf32>,
    } else {
    }
    %c0 = arith.constant 0 : index
    %c0_1 = arith.constant 0 : index
    %3 = vector.load %arg2[%c0, %c0_1] : memref<16x32xf32, #tpu.memory_space<vmem>>, vector<16x32xf32>
    %c0_2 = arith.constant 0 : index
    %c0_3 = arith.constant 0 : index
    %4 = vector.load %arg3[%c0_2, %c0_3] : memref<32x64xf32, #tpu.memory_space<vmem>>, vector<32x64xf32>
    %cst = arith.constant dense<0.000000e+00> : vector<16x64xf32>
    %5 = tpu.matmul %3, %4, %cst {dimension_numbers = #tpu.dot_dimension_numbers<[1], [0], [0], [1], [0, 0, 1, 1], [], []>} : vector<16x32xf32>, vector<32x64xf32>, vector<16x64xf32> -> vector<16x64xf32>
    %c0_4 = arith.constant 0 : index
    %c0_5 = arith.constant 0 : index
    %6 = vector.load %arg4[%c0_4, %c0_5] : memref<1x64xf32, #tpu.memory_space<vmem>>, vector<1x64xf32>
    %7 = vector.broadcast %6 : vector<1x64xf32> to vector<16x64xf32>
    %8 = arith.addf %5, %7 : vector<16x64xf32>
    %cst_6 = arith.constant 0.000000e+00 : f32
    %9 = vector.broadcast %cst_6 : f32 to vector<16x64xf32>
    %10 = arith.maximumf %8, %9 : vector<16x64xf32>
    %c0_7 = arith.constant 0 : index
    %c0_8 = arith.constant 0 : index
    %11 = vector.load %arg7[%c0_7, %c0_8] : memref<16x32xf32, #tpu.memory_space<vmem>>, vector<16x32xf32>
    %c0_9 = arith.constant 0 : index
    %c0_10 = arith.constant 0 : index
    %12 = vector.load %arg5[%c0_9, %c0_10] : memref<64x32xf32, #tpu.memory_space<vmem>>, vector<64x32xf32>
    %cst_11 = arith.constant dense<0.000000e+00> : vector<16x32xf32>
    %13 = tpu.matmul %10, %12, %cst_11 {dimension_numbers = #tpu.dot_dimension_numbers<[1], [0], [0], [1], [0, 0, 1, 1], [], []>} : vector<16x64xf32>, vector<64x32xf32>, vector<16x32xf32> -> vector<16x32xf32>
    %14 = arith.addf %11, %13 : vector<16x32xf32>
    %c0_12 = arith.constant 0 : index
    %c0_13 = arith.constant 0 : index
    %15 = vector.load %arg7[%c0_12, %c0_13] : memref<16x32xf32, #tpu.memory_space<vmem>>, vector<16x32xf32>
    tpu.vector_store %arg7[%c0_12, %c0_13], %14 {strides = array<i32>} : memref<16x32xf32, #tpu.memory_space<vmem>>, vector<16x32xf32>,
    return
  }
  func.func @transform_0(%arg0: i32, %arg1: i32) -> (i32, i32) {
    %c0_i32 = arith.constant 0 : i32
    %c0_i32_0 = arith.constant 0 : i32
    return %arg0, %c0_i32 : i32, i32
  }
  func.func @transform_1(%arg0: i32, %arg1: i32) -> (i32, i32) {
    %c0_i32 = arith.constant 0 : i32
    %c0_i32_0 = arith.constant 0 : i32
    return %c0_i32, %arg1 : i32, i32
  }
  func.func @transform_2(%arg0: i32, %arg1: i32) -> (i32, i32) {
    %c0_i32 = arith.constant 0 : i32
    %c0_i32_0 = arith.constant 0 : i32
    return %c0_i32, %arg1 : i32, i32
  }
  func.func @transform_3(%arg0: i32, %arg1: i32) -> (i32, i32) {
    %c0_i32 = arith.constant 0 : i32
    %c0_i32_0 = arith.constant 0 : i32
    return %arg1, %c0_i32 : i32, i32
  }
  func.func @transform_4(%arg0: i32, %arg1: i32) -> (i32, i32) {
    %c0_i32 = arith.constant 0 : i32
    %c0_i32_0 = arith.constant 0 : i32
    %c0_i32_1 = arith.constant 0 : i32
    return %c0_i32, %c0_i32_0 : i32, i32
  }
  func.func @transform_5(%arg0: i32, %arg1: i32) -> (i32, i32) {
    %c0_i32 = arith.constant 0 : i32
    %c0_i32_0 = arith.constant 0 : i32
    return %arg0, %c0_i32 : i32, i32
  }
}

</mosaic_0001>

<bundles_post_ra>
// kernel: positionwise_ffn_forward.1
= control target key start
LH: loop header
LB: loop body
LE: loop exit
PB: predicated region body
PF: predicated region fallthrough
CT: control target
= control target key end

     0   :  { %vm32_vm0 = vcmask 261120   ;;  %s411_s0 = inlined_call_operand.vmem [shape: f32[16,32], index: 0, kind: input, shape index: {}]   ;;  %s412_s1 = inlined_call_operand.vmem [shape: f32[32,64], index: 1, kind: input, shape index: {}]   ;;  %s413_s2 = inlined_call_operand.vmem [shape: f32[1,64], index: 2, kind: input, shape index: {}]   ;;  %s414_s3 = inlined_call_operand.vmem [shape: f32[64,32], index: 3, kind: input, shape index: {}]   ;;  %s415_s4 = inlined_call_operand.vmem [shape: f32[1,32], index: 4, kind: input, shape index: {}]   ;;  %s416_s5 = inlined_call_operand.hbm [shape: f32[16,32], index: 5, kind: output, shape index: {}]  }
   0x1   :  { %v40_v0 = vld [vmem:[%s412_s1 + $0x18] sm:$0xff]  ;;  %v39_v1 = vld [vmem:[%s412_s1 + $0x10] sm:$0xff]  ;;  %v35_v2 = vld [vmem:[%s411_s0] sm:$0xff] }
   0x2   :  { %266 = vmatprep.subr.mxu0 %v40_v0  ;;  %v38_v3 = vld [vmem:[%s412_s1 + $0x8] sm:$0xff]  ;;  %274 = vmatprep.mubr.msk.f32.mxu0 %vm32_vm0, %v35_v2  ;;  %v141_v4 = vld [vmem:[%s414_s3 + $0x38] sm:$0xff]  ;;  %v140_v5 = vld [vmem:[%s414_s3 + $0x30] sm:$0xff] }
   0x3   :  { %267 = vmatpush3.msra.mxu0 %v40_v0  ;;  %277 = vmatprep.subr.mxu1 %v141_v4 }
   0x4   :  { %268 = vmatprep.subr.mxu0 %v39_v1 }
   0x5   :  { %10 = vsyncpa [#allocation3], 0  ;;  %269 = vmatpush3.msra.mxu0 %v39_v1  ;;  %v37_v6 = vld [vmem:[%s412_s1] sm:$0xff]  ;;  %278 = vmatpush3.msra.mxu1 %v141_v4  ;;  %v139_v7 = vld [vmem:[%s414_s3 + $0x28] sm:$0xff]  ;;  %vm142_vm1 = vcmask 523264  }
   0x6   :  { %270 = vmatprep.subr.mxu0 %v38_v3  ;;  %279 = vmatprep.subr.mxu1 %v140_v5  ;;  %v36_v8 = vld [vmem:[%s411_s0 + $0x8] sm:$0xff]  ;;  %v138_v9 = vld [vmem:[%s414_s3 + $0x20] sm:$0xff]  ;;  %v137_v10 = vld [vmem:[%s414_s3 + $0x18] sm:$0xff] }
   0x7   :  { %271 = vmatpush3.msra.mxu0 %v38_v3  ;;  %280 = vmatpush3.msra.mxu1 %v140_v5  ;;  %v136_v11 = vld [vmem:[%s414_s3 + $0x10] sm:$0xff]  ;;  %v135_v12 = vld [vmem:[%s414_s3 + $0x8] sm:$0xff]  ;;  %v134_v13 = vld [vmem:[%s414_s3] sm:$0xff]  ;;  %s321_s3 = smov [#allocation2]  }
   0x8   :  { %272 = vmatprep.subr.mxu0 %v37_v6  ;;  %281 = vmatprep.subr.mxu1 %v139_v7  ;;  %v244_v14 = vld [vmem:[%s415_s4] ss:$0 sm:$0xff]  ;;  %s233_s4 = sshll.u32 %s321_s3, 4  ;;  %s234_s4 = int_to_ptr.vmem [resolvable:$true] %s233_s4 }
   0x9   :  { %273 = vmatpush3.msra.mxu0 %v37_v6  ;;  %282 = vmatpush3.msra.mxu1 %v139_v7  ;;  %34 = vst.msk [vmem:[#allocation2 + $0x8] sm:$0xff] %vm32_vm0, %v244_v14  ;;  %33 = vst.msk [vmem:[#allocation2] sm:$0xff] %vm32_vm0, %v244_v14  ;;  %v245_v15 = vld [vmem:[%s413_s2] ss:$0 sm:$0xff]  ;;  %s299_s2 = scalar_lea.vmem %s234_s4, 256  ;;  %p304_p1 = scmp.lt.s32.totalorder %s234_s4, %s234_s4 }
   0xa   :  { %275 = vmatmul.mubr.msk.f32.vlgmr.msra.gmra.mxu0 %vm32_vm0, %v36_v8  ;;  %283 = vmatprep.subr.mxu1 %v138_v9  ;;  %p300_p0 = scmp.ne.s32.totalorder %s234_s4, %s299_s2  ;;  %p305_p2 = scmp.lt.s32.totalorder %s299_s2, %s299_s2 }
   0xb   :  { %284 = vmatpush3.msra.mxu1 %v138_v9 }
   0xc   :  { %285 = vmatprep.subr.mxu1 %v137_v10  ;;  %p306_p3 = por %p305_p2, %p304_p1 }
   0xd   :  { %286 = vmatpush3.msra.mxu1 %v137_v10 }
   0xe   :  { %287 = vmatprep.subr.mxu1 %v136_v11  ;;  %p307_p4 = pnand %p306_p3, %p300_p0 }
   0xf   :  { %288 = vmatpush3.msra.mxu1 %v136_v11 }
  0x10   :  { %289 = vmatprep.subr.mxu1 %v135_v12  ;;  %v133_v22 = vld [vmem:[#allocation2 + $0x8] sm:$0xff]  ;;  %v132_v24 = vld [vmem:[#allocation2] sm:$0xff] }
  0x11   :  { %290 = vmatpush3.msra.mxu1 %v135_v12 }
  0x12   :  { %291 = vmatprep.subr.mxu1 %v134_v13 }
  0x13   :  { %292 = vmatpush3.msra.mxu1 %v134_v13 }
  0xca   :  { %v276_v16 = vpop.f32.mrf.mxu0 }
  0xcb   :  { %v127_v17 = vadd.f32 %v276_v16, %v245_v15 }
  0xcc   :  { %v121_v18 = vpop.f32.mrf.mxu0 }
  0xcd   :  { %v122_v19 = vadd.f32 %v245_v15, %v121_v18  ;;  %v131_v21 = vmax.f32 %v127_v17, 0.0 }
  0xcf   :  { %v130_v20 = vmax.f32 %v122_v19, 0.0 }
  0xd1   :  { %293 = vmatprep.mubr.msk.f32.mxu1 %vm142_vm1, %v130_v20 }
  0xd2   :  { %294 = vmatmul.mubr.msk.f32.vlgmr.msra.gmra.mxu1 %vm142_vm1, %v131_v21 }
 0x192   :  { %v295_v23 = vpop.f32.mrf.mxu1 }
 0x193   :  { %v225_v25 = vadd.f32 %v295_v23, %v133_v22 }
 0x194   :  { %v215_v26 = vpop.f32.mrf.mxu1 }
 0x195   :  { %227 = vst.msk [vmem:[#allocation2 + $0x8] sm:$0xff] %vm32_vm0, %v225_v25  ;;  %v224_v27 = vadd.f32 %v215_v26, %v132_v24 }
 0x197   :  { %226 = vst.msk [vmem:[#allocation2] sm:$0xff] %vm32_vm0, %v224_v27 }
 0x198   :  { %310 = shalt.err (!%p307_p4)
}
 0x199   :  { %s322_s23 = smov 128   ;;  %s323_s24 = smov 8  }
 0x19a   :  { %239 = dma.vmem_to_hbm [thread:$0]  %s234_s4, 256, %s416_s5, [#allocation3], %s322_s23, %s322_s23, %s323_s24  }
 0x19b   :  { %319 = dma.done.wait [#allocation3], 256  }
 0x19c   :  { %320 = vsyncadd [#allocation3], 4294967040 }
 0x19d   :  { %243 = vsyncpa [#allocation3], 1 }

</bundles_post_ra>
